<compile_context>
chip_gen: v7x
topology: tpu7x:2x2x1
jax: 0.10.0
libtpu: 0.0.40
codegen_flags: <defaults>
</compile_context>

<pallas_src>
import functools

import jax
import jax.numpy as jnp
from jax import lax
from jax.experimental import pallas as pl
from jax.experimental.pallas import tpu as pltpu


def _block_weight_sum_f32(ref):
    """Sum the member axis of a [Nb, D_in, To] VMEM block in f32 without
    materializing a full-block f32 intermediate (bounded carry)."""
    nb = ref.shape[0]
    acc = ref[0].astype(jnp.float32)
    if nb == 1:
        return acc

    def body(m, a):
        return a + ref[m].astype(jnp.float32)

    return lax.fori_loop(1, nb, body, acc)


def _aggreg_kernel(x_ref, w_ref, v_ref, bzm_ref, btm_ref, z_ref, t_ref, *, inv_n):
    """One grid step: accumulate x @ sum(W_blk) and x @ sum(V_blk) into the
    resident z / t output blocks (reduction axis = member blocks, innermost)."""
    n = pl.program_id(1)

    # On-chip f32 sum of the Nb member weights (op is linear in W), then a
    # single MXU matmul per head per step:  x @ sum_n W_n == sum_n (x @ W_n).
    w_sum = _block_weight_sum_f32(w_ref)                  # [D_in, To] f32
    v_sum = _block_weight_sum_f32(v_ref)                  # [D_in, To] f32
    x = x_ref[...]
    z_part = jnp.dot(x, w_sum, preferred_element_type=jnp.float32)
    t_part = jnp.dot(x, v_sum, preferred_element_type=jnp.float32)

    @pl.when(n == 0)
    def _():
        # First member block: write directly (saves a zero-fill + VMEM read).
        z_ref[...] = z_part
        t_ref[...] = t_part

    @pl.when(n > 0)
    def _():
        z_ref[...] += z_part
        t_ref[...] += t_part

    @pl.when(n == pl.num_programs(1) - 1)
    def _():
        # Scale by 1/N and add the (pre-averaged) biases exactly once.
        z_ref[...] = z_ref[...] * inv_n + bzm_ref[...]
        t_ref[...] = t_ref[...] * inv_n + btm_ref[...]


def _tpu_generation():
    try:
        kind = jax.devices()[0].device_kind.lower()
    except Exception:
        return None
    for tag in ("v7", "v6", "v5"):
        if tag in kind:
            return tag
    return None


def _gen_params(gen):
    """Returns (weight-block byte cap per step, vmem_limit_bytes, want >=2 out tiles)."""
    if gen == "v7":
        # 3.2 TB/s HBM: amortize the ~0.35us/step overhead with big blocks;
        # 2 x 12 MiB double-buffered fits an explicit 32 MiB scoped VMEM.
        return 12 * 1024 * 1024, 32 * 1024 * 1024, True
    if gen == "v6":
        # 2 x 8 MiB double-buffered is well inside the 32 MiB scoped default.
        return 8 * 1024 * 1024, None, False
    if gen == "v5":
        # Raise the scoped limit past the 16 MiB default so 6 MiB blocks fit.
        return 6 * 1024 * 1024, 32 * 1024 * 1024, False
    return 4 * 1024 * 1024, None, False


def _default_out_tile(d_out, want_multi_tile):
    if want_multi_tile:
        # Guarantee >= 2 lane-dense parallel tiles so both v7x TCs stream.
        if d_out % 256 == 0:
            return d_out // 2
        if d_out % 128 == 0 and d_out > 128:
            return 128
    # Single-TC chips: one tile -> fully contiguous weight DMAs, fewer steps.
    return d_out


def _largest_divisor_leq(n, cap):
    best = 1
    for d in range(1, n + 1):
        if d <= cap and n % d == 0:
            best = d
    return best


def aggreg_pallas(x, W, bz, V, bt, *, members_per_block=None, out_tile=None):
    """Pallas forward of `aggreg` over an ensemble of two-headed linear members.

    x:  [B, D_in]
    W, V:   [N, D_in, D_out]  (z-head / t-head member weights; pre-cast them to
            bf16 once at module init for ~2x less HBM traffic — the kernel
            accumulates in f32 either way)
    bz, bt: [N, 1, D_out]
    Returns (z, t), each [B, D_out] float32 (matching the PyTorch forward).
    """
    B, D_in = x.shape
    N, _, D_out = W.shape
    assert V.shape == (N, D_in, D_out)

    gen = _tpu_generation()
    cap_bytes, vmem_limit, want_multi = _gen_params(gen)

    # Biases hoisted out of the pipeline: mean over members (tiny vs. weights),
    # added exactly once at the end of the reduction.
    bz_mean = jnp.mean(bz, axis=0, dtype=jnp.float32).reshape(1, D_out)
    bt_mean = jnp.mean(bt, axis=0, dtype=jnp.float32).reshape(1, D_out)

    # Output tile along D_out (lane-dense).
    To = out_tile if out_tile is not None else _default_out_tile(D_out, want_multi)
    assert D_out % To == 0, "out_tile must divide D_out"
    assert To == D_out or To % 128 == 0, "out_tile must be lane-dense"
    num_out_tiles = D_out // To

    # Members per grid step: cap the combined W+V block so the double-buffered
    # pipeline fits comfortably inside scoped VMEM on every generation.
    per_member_bytes = D_in * To * (W.dtype.itemsize + V.dtype.itemsize)
    if members_per_block is not None:
        Nb = members_per_block
        assert N % Nb == 0, "members_per_block must divide N"
    else:
        Nb = _largest_divisor_leq(N, max(1, cap_bytes // max(1, per_member_bytes)))
    num_member_blocks = N // Nb

    kernel = functools.partial(_aggreg_kernel, inv_n=1.0 / N)

    grid_spec = pltpu.PrefetchScalarGridSpec(
        num_scalar_prefetch=0,
        grid=(num_out_tiles, num_member_blocks),              # reduction axis last
        in_specs=[
            pl.BlockSpec((B, D_in), lambda j, n: (0, 0)),          # x (resident)
            pl.BlockSpec((Nb, D_in, To), lambda j, n: (n, 0, j)),  # W member block
            pl.BlockSpec((Nb, D_in, To), lambda j, n: (n, 0, j)),  # V member block
            pl.BlockSpec((1, To), lambda j, n: (0, j)),            # mean bz
            pl.BlockSpec((1, To), lambda j, n: (0, j)),            # mean bt
        ],
        out_specs=[
            pl.BlockSpec((B, To), lambda j, n: (0, j)),            # z accumulator
            pl.BlockSpec((B, To), lambda j, n: (0, j)),            # t accumulator
        ],
    )

    weight_bytes = W.size * W.dtype.itemsize + V.size * V.dtype.itemsize
    io_bytes = (weight_bytes
                + num_out_tiles * x.size * x.dtype.itemsize
                + 2 * B * D_out * 4
                + 2 * D_out * 4)
    cost = pl.CostEstimate(flops=4 * B * D_in * D_out * N,
                           transcendentals=0,
                           bytes_accessed=io_bytes)

    z, t = pl.pallas_call(
        kernel,
        out_shape=(jax.ShapeDtypeStruct((B, D_out), jnp.float32),
                   jax.ShapeDtypeStruct((B, D_out), jnp.float32)),
        grid_spec=grid_spec,
        compiler_params=pltpu.CompilerParams(
            dimension_semantics=("parallel", "arbitrary"),
            vmem_limit_bytes=vmem_limit),
        cost_estimate=cost,
    )(x, W, V, bz_mean, bt_mean)
    return z, t


def aggreg_reference(x, W, bz, V, bt):
    N = W.shape[0]
    z = jnp.zeros((x.shape[0], W.shape[2]), jnp.float32)
    t = jnp.zeros_like(z)
    for n in range(N):
        z = z + (x @ W[n] + bz[n])
        t = t + (x @ V[n] + bt[n])
    return z / N, t / N


def _make_inputs(key, B, D_in, D_out, N):
    kx, kw, kbz, kv, kbt = jax.random.split(key, 5)
    x = jax.random.normal(kx, (B, D_in), dtype=jnp.float32)
    W = jax.random.normal(kw, (N, D_in, D_out), dtype=jnp.float32) * 0.1
    bz = jax.random.normal(kbz, (N, 1, D_out), dtype=jnp.float32) * 0.1
    V = jax.random.normal(kv, (N, D_in, D_out), dtype=jnp.float32) * 0.1
    bt = jax.random.normal(kbt, (N, 1, D_out), dtype=jnp.float32) * 0.1
    return x, W, bz, V, bt


if __name__ == "__main__":
    k0, k1 = jax.random.split(jax.random.PRNGKey(0), 2)

    # Case 1: small toy shapes (B=8, D_in=32, D_out=32, N=4), f32 weights,
    # everything fits one grid step (all members blocked together).
    x, W, bz, V, bt = _make_inputs(k0, 8, 32, 32, 4)
    z, t = aggreg_pallas(x, W, bz, V, bt)
    jax.block_until_ready((z, t))
    z_ref, t_ref = aggreg_reference(x, W, bz, V, bt)
    assert jnp.allclose(z, z_ref, atol=1e-5, rtol=1e-5)
    assert jnp.allclose(t, t_ref, atol=1e-5, rtol=1e-5)

    # Case 2: exercise the member-block reduction axis (Nb=2 over N=6), the
    # parallel output-tile axis (D_out=256 -> two 128-lane tiles), and the
    # bf16 weight-streaming path (weights cast ONCE at "init", outside the call;
    # the kernel accumulates in f32).
    x2, W2, bz2, V2, bt2 = _make_inputs(k1, 8, 32, 256, 6)
    W2_bf16 = W2.astype(jnp.bfloat16)       # init-time cast, not per call
    V2_bf16 = V2.astype(jnp.bfloat16)
    z2, t2 = aggreg_pallas(x2, W2_bf16, bz2, V2_bf16, bt2,
                           members_per_block=2, out_tile=128)
    jax.block_until_ready((z2, t2))
    z2_ref, t2_ref = aggreg_reference(x2, W2, bz2, V2, bt2)
    assert jnp.allclose(z2, z2_ref, atol=2e-2, rtol=2e-2)
    assert jnp.allclose(t2, t2_ref, atol=2e-2, rtol=2e-2)

    print("KERNEL_OK")
</pallas_src>

<mosaic_0001>
module attributes {stable_mosaic.version = 11 : i64} {
  func.func @_aggreg_kernel(%arg0: i32, %arg1: i32, %arg2: memref<8x32xf32, #tpu.memory_space<vmem>>, %arg3: memref<4x32x32xf32, #tpu.memory_space<vmem>>, %arg4: memref<4x32x32xf32, #tpu.memory_space<vmem>>, %arg5: memref<1x32xf32, #tpu.memory_space<vmem>>, %arg6: memref<1x32xf32, #tpu.memory_space<vmem>>, %arg7: memref<8x32xf32, #tpu.memory_space<vmem>>, %arg8: memref<8x32xf32, #tpu.memory_space<vmem>>) attributes {dimension_semantics = [#tpu.dimension_semantics<parallel>, #tpu.dimension_semantics<arbitrary>], iteration_bounds = array<i64: 1, 1>, scalar_prefetch = 0 : i64, scratch_operands = 0 : i64, tpu.core_type = #tpu.core_type<tc>, window_params = [{pipeline_mode = #tpu.pipeline_mode<synchronous>, transform_indices = @transform_0, window_bounds = array<i64: 8, 32>}, {transform_indices = @transform_1, window_bounds = array<i64: 4, 32, 32>}, {transform_indices = @transform_2, window_bounds = array<i64: 4, 32, 32>}, {transform_indices = @transform_3, window_bounds = array<i64: 1, 32>}, {transform_indices = @transform_4, window_bounds = array<i64: 1, 32>}, {transform_indices = @transform_5, window_bounds = array<i64: 8, 32>}, {transform_indices = @transform_6, window_bounds = array<i64: 8, 32>}]} {
    %c0 = arith.constant 0 : index
    %c0_0 = arith.constant 0 : index
    %c0_1 = arith.constant 0 : index
    %0 = vector.load %arg3[%c0, %c0_0, %c0_1] : memref<4x32x32xf32, #tpu.memory_space<vmem>>, vector<1x32x32xf32>
    %1 = vector.shape_cast %0 : vector<1x32x32xf32> to vector<32x32xf32>
    %c1_i32 = arith.constant 1 : i32
    %c3_i32 = arith.constant 3 : i32
    %2 = arith.addi %c1_i32, %c3_i32 : i32
    %c1_i32_2 = arith.constant 1 : i32
    %3 = scf.for %arg9 = %c1_i32 to %2 step %c1_i32_2 iter_args(%arg10 = %1) -> (vector<32x32xf32>)  : i32 {
      %20 = arith.index_cast %arg9 : i32 to index
      %c0_19 = arith.constant 0 : index
      %c0_20 = arith.constant 0 : index
      %21 = vector.load %arg3[%20, %c0_19, %c0_20] : memref<4x32x32xf32, #tpu.memory_space<vmem>>, vector<1x32x32xf32>
      %22 = vector.shape_cast %21 : vector<1x32x32xf32> to vector<32x32xf32>
      %23 = arith.addf %arg10, %22 : vector<32x32xf32>
      scf.yield %23 : vector<32x32xf32>
    }
    %c3_i32_3 = arith.constant 3 : i32
    %c0_4 = arith.constant 0 : index
    %c0_5 = arith.constant 0 : index
    %c0_6 = arith.constant 0 : index
    %4 = vector.load %arg4[%c0_4, %c0_5, %c0_6] : memref<4x32x32xf32, #tpu.memory_space<vmem>>, vector<1x32x32xf32>
    %5 = vector.shape_cast %4 : vector<1x32x32xf32> to vector<32x32xf32>
    %c1_i32_7 = arith.constant 1 : i32
    %c3_i32_8 = arith.constant 3 : i32
    %6 = arith.addi %c1_i32_7, %c3_i32_8 : i32
    %c1_i32_9 = arith.constant 1 : i32
    %7 = scf.for %arg9 = %c1_i32_7 to %6 step %c1_i32_9 iter_args(%arg10 = %5) -> (vector<32x32xf32>)  : i32 {
      %20 = arith.index_cast %arg9 : i32 to index
      %c0_19 = arith.constant 0 : index
      %c0_20 = arith.constant 0 : index
      %21 = vector.load %arg4[%20, %c0_19, %c0_20] : memref<4x32x32xf32, #tpu.memory_space<vmem>>, vector<1x32x32xf32>
      %22 = vector.shape_cast %21 : vector<1x32x32xf32> to vector<32x32xf32>
      %23 = arith.addf %arg10, %22 : vector<32x32xf32>
      scf.yield %23 : vector<32x32xf32>
    }
    %c3_i32_10 = arith.constant 3 : i32
    %c0_11 = arith.constant 0 : index
    %c0_12 = arith.constant 0 : index
    %8 = vector.load %arg2[%c0_11, %c0_12] : memref<8x32xf32, #tpu.memory_space<vmem>>, vector<8x32xf32>
    %cst = arith.constant dense<0.000000e+00> : vector<8x32xf32>
    %9 = tpu.matmul %8, %3, %cst {dimension_numbers = #tpu.dot_dimension_numbers<[1], [0], [0], [1], [0, 0, 1, 1], [], []>} : vector<8x32xf32>, vector<32x32xf32>, vector<8x32xf32> -> vector<8x32xf32>
    %cst_13 = arith.constant dense<0.000000e+00> : vector<8x32xf32>
    %10 = tpu.matmul %8, %7, %cst_13 {dimension_numbers = #tpu.dot_dimension_numbers<[1], [0], [0], [1], [0, 0, 1, 1], [], []>} : vector<8x32xf32>, vector<32x32xf32>, vector<8x32xf32> -> vector<8x32xf32>
    %c0_i32 = arith.constant 0 : i32
    %11 = arith.cmpi eq, %arg1, %c0_i32 : i32
    %12 = arith.extui %11 : i1 to i32
    %c0_i32_14 = arith.constant 0 : i32
    %13 = arith.cmpi ne, %12, %c0_i32_14 : i32
    scf.if %13 {
      %c0_19 = arith.constant 0 : index
      %c0_20 = arith.constant 0 : index
      %20 = vector.load %arg7[%c0_19, %c0_20] : memref<8x32xf32, #tpu.memory_space<vmem>>, vector<8x32xf32>
      tpu.vector_store %arg7[%c0_19, %c0_20], %9 {strides = array<i32>} : memref<8x32xf32, #tpu.memory_space<vmem>>, vector<8x32xf32>,
      %c0_21 = arith.constant 0 : index
      %c0_22 = arith.constant 0 : index
      %21 = vector.load %arg8[%c0_21, %c0_22] : memref<8x32xf32, #tpu.memory_space<vmem>>, vector<8x32xf32>
      tpu.vector_store %arg8[%c0_21, %c0_22], %10 {strides = array<i32>} : memref<8x32xf32, #tpu.memory_space<vmem>>, vector<8x32xf32>,
    } else {
    }
    %c0_i32_15 = arith.constant 0 : i32
    %14 = arith.cmpi sgt, %arg1, %c0_i32_15 : i32
    %15 = arith.extui %14 : i1 to i32
    %c0_i32_16 = arith.constant 0 : i32
    %16 = arith.cmpi ne, %15, %c0_i32_16 : i32
    scf.if %16 {
      %c0_19 = arith.constant 0 : index
      %c0_20 = arith.constant 0 : index
      %20 = vector.load %arg7[%c0_19, %c0_20] : memref<8x32xf32, #tpu.memory_space<vmem>>, vector<8x32xf32>
      %21 = arith.addf %20, %9 : vector<8x32xf32>
      %c0_21 = arith.constant 0 : index
      %c0_22 = arith.constant 0 : index
      %22 = vector.load %arg7[%c0_21, %c0_22] : memref<8x32xf32, #tpu.memory_space<vmem>>, vector<8x32xf32>
      tpu.vector_store %arg7[%c0_21, %c0_22], %21 {strides = array<i32>} : memref<8x32xf32, #tpu.memory_space<vmem>>, vector<8x32xf32>,
      %c0_23 = arith.constant 0 : index
      %c0_24 = arith.constant 0 : index
      %23 = vector.load %arg8[%c0_23, %c0_24] : memref<8x32xf32, #tpu.memory_space<vmem>>, vector<8x32xf32>
      %24 = arith.addf %23, %10 : vector<8x32xf32>
      %c0_25 = arith.constant 0 : index
      %c0_26 = arith.constant 0 : index
      %25 = vector.load %arg8[%c0_25, %c0_26] : memref<8x32xf32, #tpu.memory_space<vmem>>, vector<8x32xf32>
      tpu.vector_store %arg8[%c0_25, %c0_26], %24 {strides = array<i32>} : memref<8x32xf32, #tpu.memory_space<vmem>>, vector<8x32xf32>,
    } else {
    }
    %c0_i32_17 = arith.constant 0 : i32
    %17 = arith.cmpi eq, %arg1, %c0_i32_17 : i32
    %18 = arith.extui %17 : i1 to i32
    %c0_i32_18 = arith.constant 0 : i32
    %19 = arith.cmpi ne, %18, %c0_i32_18 : i32
    scf.if %19 {
      %c0_19 = arith.constant 0 : index
      %c0_20 = arith.constant 0 : index
      %20 = vector.load %arg7[%c0_19, %c0_20] : memref<8x32xf32, #tpu.memory_space<vmem>>, vector<8x32xf32>
      %cst_21 = arith.constant 2.500000e-01 : f32
      %21 = vector.broadcast %cst_21 : f32 to vector<8x32xf32>
      %22 = arith.mulf %20, %21 : vector<8x32xf32>
      %c0_22 = arith.constant 0 : index
      %c0_23 = arith.constant 0 : index
      %23 = vector.load %arg5[%c0_22, %c0_23] : memref<1x32xf32, #tpu.memory_space<vmem>>, vector<1x32xf32>
      %24 = vector.broadcast %23 : vector<1x32xf32> to vector<8x32xf32>
      %25 = arith.addf %22, %24 : vector<8x32xf32>
      %c0_24 = arith.constant 0 : index
      %c0_25 = arith.constant 0 : index
      %26 = vector.load %arg7[%c0_24, %c0_25] : memref<8x32xf32, #tpu.memory_space<vmem>>, vector<8x32xf32>
      tpu.vector_store %arg7[%c0_24, %c0_25], %25 {strides = array<i32>} : memref<8x32xf32, #tpu.memory_space<vmem>>, vector<8x32xf32>,
      %c0_26 = arith.constant 0 : index
      %c0_27 = arith.constant 0 : index
      %27 = vector.load %arg8[%c0_26, %c0_27] : memref<8x32xf32, #tpu.memory_space<vmem>>, vector<8x32xf32>
      %cst_28 = arith.constant 2.500000e-01 : f32
      %28 = vector.broadcast %cst_28 : f32 to vector<8x32xf32>
      %29 = arith.mulf %27, %28 : vector<8x32xf32>
      %c0_29 = arith.constant 0 : index
      %c0_30 = arith.constant 0 : index
      %30 = vector.load %arg6[%c0_29, %c0_30] : memref<1x32xf32, #tpu.memory_space<vmem>>, vector<1x32xf32>
      %31 = vector.broadcast %30 : vector<1x32xf32> to vector<8x32xf32>
      %32 = arith.addf %29, %31 : vector<8x32xf32>
      %c0_31 = arith.constant 0 : index
      %c0_32 = arith.constant 0 : index
      %33 = vector.load %arg8[%c0_31, %c0_32] : memref<8x32xf32, #tpu.memory_space<vmem>>, vector<8x32xf32>
      tpu.vector_store %arg8[%c0_31, %c0_32], %32 {strides = array<i32>} : memref<8x32xf32, #tpu.memory_space<vmem>>, vector<8x32xf32>,
    } else {
    }
    return
  }
  func.func @transform_0(%arg0: i32, %arg1: i32) -> (i32, i32) {
    %c0_i32 = arith.constant 0 : i32
    %c0_i32_0 = arith.constant 0 : i32
    %c0_i32_1 = arith.constant 0 : i32
    return %c0_i32, %c0_i32_0 : i32, i32
  }
  func.func @transform_1(%arg0: i32, %arg1: i32) -> (i32, i32, i32) {
    %c0_i32 = arith.constant 0 : i32
    %c0_i32_0 = arith.constant 0 : i32
    return %arg1, %c0_i32, %arg0 : i32, i32, i32
  }
  func.func @transform_2(%arg0: i32, %arg1: i32) -> (i32, i32, i32) {
    %c0_i32 = arith.constant 0 : i32
    %c0_i32_0 = arith.constant 0 : i32
    return %arg1, %c0_i32, %arg0 : i32, i32, i32
  }
  func.func @transform_3(%arg0: i32, %arg1: i32) -> (i32, i32) {
    %c0_i32 = arith.constant 0 : i32
    %c0_i32_0 = arith.constant 0 : i32
    return %c0_i32, %arg0 : i32, i32
  }
  func.func @transform_4(%arg0: i32, %arg1: i32) -> (i32, i32) {
    %c0_i32 = arith.constant 0 : i32
    %c0_i32_0 = arith.constant 0 : i32
    return %c0_i32, %arg0 : i32, i32
  }
  func.func @transform_5(%arg0: i32, %arg1: i32) -> (i32, i32) {
    %c0_i32 = arith.constant 0 : i32
    %c0_i32_0 = arith.constant 0 : i32
    return %c0_i32, %arg0 : i32, i32
  }
  func.func @transform_6(%arg0: i32, %arg1: i32) -> (i32, i32) {
    %c0_i32 = arith.constant 0 : i32
    %c0_i32_0 = arith.constant 0 : i32
    return %c0_i32, %arg0 : i32, i32
  }
}

</mosaic_0001>

<bundles_post_ra>
// kernel: tpu_custom_call.1
= control target key start
LH: loop header
LB: loop body
LE: loop exit
PB: predicated region body
PF: predicated region fallthrough
CT: control target
= control target key end

     0   :  { %12 = vsyncpa [#allocation3], 0  ;;  %s826_s0 = inlined_call_operand.hbm [shape: f32[8,32], index: 0, kind: input, shape index: {}]   ;;  %s827_s1 = inlined_call_operand.hbm [shape: f32[4,32,32], index: 1, kind: input, shape index: {}]   ;;  %s828_s2 = inlined_call_operand.hbm [shape: f32[4,32,32], index: 2, kind: input, shape index: {}]   ;;  %s829_s3 = inlined_call_operand.vmem [shape: f32[1,32], index: 3, kind: input, shape index: {}]   ;;  %s830_s4 = inlined_call_operand.vmem [shape: f32[1,32], index: 4, kind: input, shape index: {}]   ;;  %s831_s5 = inlined_call_operand.hbm [shape: f32[8,32], index: 5, kind: output, shape index: {0}]   ;;  %s832_s6 = inlined_call_operand.hbm [shape: f32[8,32], index: 6, kind: output, shape index: {1}]  }
   0x1   :  { %13 = vsyncpa [#allocation6], 0 }
   0x2   :  { %14 = vsyncpa [#allocation4], 0 }
   0x3   :  { %15 = vsyncpa [#allocation10], 0  ;;  %s703_s21 = smov [#allocation5]   ;;  %s505_s25 = scalar_lea.hbm %s827_s1, 2048 }
   0x4   :  { %s31_s22 = sshll.u32 %s703_s21, 4  ;;  %p506_p0 = scmp.ne.s32.totalorder %s827_s1, %s505_s25  ;;  %s32_s22 = int_to_ptr.vmem [resolvable:$true] %s31_s22 }
   0x5   :  { %p509_p1 = scmp.lt.u32.totalorder %s505_s25, %s827_s1 }
   0x7   :  { %p511_p2 = pnand %p509_p1, %p506_p0 }
   0x9   :  { %514 = shalt.err (!%p511_p2)
}
   0xa   :  { %s515_s30 = scalar_lea.vmem %s32_s22, 2048  ;;  %p520_p4 = scmp.lt.s32.totalorder %s32_s22, %s32_s22 }
   0xb   :  { %p516_p3 = scmp.ne.s32.totalorder %s32_s22, %s515_s30  ;;  %p521_p5 = scmp.lt.s32.totalorder %s515_s30, %s515_s30 }
   0xd   :  { %p522_p6 = por %p521_p5, %p520_p4 }
   0xf   :  { %p523_p7 = pnand %p522_p6, %p516_p3 }
  0x11   :  { %526 = shalt.err (!%p523_p7)
}
  0x12   :  { %s704_s7 = smov 128   ;;  %s705_s8 = smov 8  }
  0x13   :  { %37 = dma.hbm_to_vmem [thread:$0]  %s827_s1, 2048, %s32_s22, [#allocation6], %s704_s7, %s704_s7, %s705_s8  }
  0x14   :  { %s706_s11 = smov [#allocation2]   ;;  %s707_s13 = smov [#allocation7]  }
  0x15   :  { %s22_s12 = sshll.u32 %s706_s11, 4  ;;  %s43_s14 = sshll.u32 %s707_s13, 4  ;;  %s23_s12 = int_to_ptr.vmem [resolvable:$true] %s22_s12  ;;  %s44_s14 = int_to_ptr.vmem [resolvable:$true] %s43_s14 }
  0x16   :  { %s527_s17 = scalar_lea.hbm %s826_s0, 128 }
  0x17   :  { %p528_p8 = scmp.ne.s32.totalorder %s826_s0, %s527_s17  ;;  %p531_p9 = scmp.lt.u32.totalorder %s527_s17, %s826_s0 }
  0x19   :  { %p533_p10 = pnand %p531_p9, %p528_p8 }
  0x1b   :  { %536 = shalt.err (!%p533_p10)
}
  0x1c   :  { %s537_s1 = scalar_lea.vmem %s23_s12, 128  ;;  %p542_p12 = scmp.lt.s32.totalorder %s23_s12, %s23_s12 }
  0x1d   :  { %p538_p11 = scmp.ne.s32.totalorder %s23_s12, %s537_s1  ;;  %p543_p13 = scmp.lt.s32.totalorder %s537_s1, %s537_s1 }
  0x1f   :  { %p544_p0 = por %p543_p13, %p542_p12 }
  0x21   :  { %p545_p1 = pnand %p544_p0, %p538_p11 }
  0x23   :  { %548 = shalt.err (!%p545_p1)
}
  0x24   :  { %25 = dma.hbm_to_vmem [thread:$0]  %s826_s0, 128, %s23_s12, [#allocation3]  }
  0x25   :  { %s549_s26 = scalar_lea.hbm %s828_s2, 2048 }
  0x26   :  { %p550_p2 = scmp.ne.s32.totalorder %s828_s2, %s549_s26  ;;  %p553_p3 = scmp.lt.u32.totalorder %s549_s26, %s828_s2 }
  0x28   :  { %p555_p4 = pnand %p553_p3, %p550_p2 }
  0x2a   :  { %558 = shalt.err (!%p555_p4)
}
  0x2b   :  { %s559_s9 = scalar_lea.vmem %s44_s14, 2048  ;;  %p564_p6 = scmp.lt.s32.totalorder %s44_s14, %s44_s14 }
  0x2c   :  { %p560_p5 = scmp.ne.s32.totalorder %s44_s14, %s559_s9  ;;  %p565_p7 = scmp.lt.s32.totalorder %s559_s9, %s559_s9 }
  0x2e   :  { %p566_p8 = por %p565_p7, %p564_p6 }
  0x30   :  { %p567_p9 = pnand %p566_p8, %p560_p5 }
  0x32   :  { %570 = shalt.err (!%p567_p9)
}
  0x33   :  { %49 = dma.hbm_to_vmem [thread:$0]  %s828_s2, 2048, %s44_s14, [#allocation6], %s704_s7, %s704_s7, %s705_s8  }
  0x34   :  { %655 = dma.done.wait [#allocation3], 128  }
  0x35   :  { %656 = vsyncadd [#allocation3], 4294967168 }
  0x36   :  { %657 = dma.done.wait [#allocation6], 4096  }
  0x37   :  { %658 = vsyncadd [#allocation6], 4294963200  ;;  %v63_v0 = vld [vmem:[#allocation5] sm:$0xff]   ;;  %v64_v1 = vld [vmem:[#allocation5 + $0x8] sm:$0xff]   ;;  %s679_s11 = smov 1  }
  0x38   :  { %v65_v2 = vld [vmem:[#allocation5 + $0x10] sm:$0xff]   ;;  %v66_v3 = vld [vmem:[#allocation5 + $0x18] sm:$0xff]   ;;  %v671_v6 = vmov %v64_v1   ;;  %v675_v7 = vmov %v63_v0  }
  0x39   :  { %v663_v4 = vmov %v66_v3   ;;  %v667_v5 = vmov %v65_v2  }
  0x3a LB: > { %s365_s2 = sshll.u32 %s681_s11, 5  ;;  %s72_s11 = sadd.s32 1, %s681_s11   ;;  %s681_s11 = sphi %s679_s11, %s72_s11   ;;  %v677_v7 = vphi %v675_v7, %v676_v7   ;;  %v673_v6 = vphi %v671_v6, %v672_v6   ;;  %v669_v5 = vphi %v667_v5, %v668_v5   ;;  %v665_v4 = vphi %v663_v4, %v664_v4  }
  0x3b   : > { %s78_s7 = scalar_lea.vmem [#allocation5], %s365_s2  ;;  %p69_p10 = scmp.ge.s32.totalorder %s72_s11, 4  }
  0x3c   : > { %v79_v8 = vld [vmem:[%s78_s7] sm:$0xff]  ;;  %v80_v9 = vld [vmem:[%s78_s7 + $0x8] sm:$0xff]  ;;  %v81_v10 = vld [vmem:[%s78_s7 + $0x10] sm:$0xff]  ;;  %s699_s8 = smov (%p69_p10), 1  }
  0x3d   : > { %v82_v11 = vld [vmem:[%s78_s7 + $0x18] sm:$0xff]  ;;  %v83_v12 = vadd.f32 %v677_v7, %v79_v8   ;;  %v84_v13 = vadd.f32 %v673_v6, %v80_v9   ;;  %v85_v14 = vadd.f32 %v669_v5, %v81_v10   ;;  %71 = sbr.rel (!%p69_p10) target bundleno = 58 (0x3a), region = 88  ;;  %v87_v16 = vld [vmem:[#allocation7] sm:$0xff] (%p69_p10)   ;;  %v88_v17 = vld [vmem:[#allocation7 + $0x8] sm:$0xff] (%p69_p10)  }
  0x3e   : > { %v86_v15 = vadd.f32 %v665_v4, %v82_v11   ;;  %v89_v18 = vld [vmem:[#allocation7 + $0x10] sm:$0xff] (%p69_p10)   ;;  %v90_v19 = vld [vmem:[#allocation7 + $0x18] sm:$0xff] (%p69_p10)   ;;  %v691_v22 = vmov (%p69_p10), %v88_v17   ;;  %v695_v23 = vmov (%p69_p10), %v87_v16  }
  0x3f   : > { %v668_v5 = vmov %v85_v14   ;;  %v672_v6 = vmov %v84_v13   ;;  %v676_v7 = vmov %v83_v12   ;;  %v683_v20 = vmov (%p69_p10), %v90_v19  }
  0x40   : > { %v664_v4 = vmov %v86_v15   ;;  %v687_v21 = vmov (%p69_p10), %v89_v18  }
  0x44 LB: > { %s366_s12 = sshll.u32 %s701_s8, 5  ;;  %s96_s8 = sadd.s32 1, %s701_s8   ;;  %s701_s8 = sphi %s699_s8, %s96_s8   ;;  %v697_v23 = vphi %v695_v23, %v696_v23   ;;  %v693_v22 = vphi %v691_v22, %v692_v22   ;;  %v689_v21 = vphi %v687_v21, %v688_v21   ;;  %v685_v20 = vphi %v683_v20, %v684_v20  }
  0x45   : > { %s102_s13 = scalar_lea.vmem [#allocation7], %s366_s12  ;;  %p93_p11 = scmp.ge.s32.totalorder %s96_s8, 4  }
  0x46   : > { %v103_v24 = vld [vmem:[%s102_s13] sm:$0xff]  ;;  %v104_v25 = vld [vmem:[%s102_s13 + $0x8] sm:$0xff]  ;;  %v105_v26 = vld [vmem:[%s102_s13 + $0x10] sm:$0xff]  ;;  %v404_v32 = vpack.c.bf16 (%p93_p11), %v84_v13, %v83_v12  ;;  %v708_v34 = vmov (%p93_p11), 0.0|0.0   ;;  %v407_v35 = vpack.c.bf16 (%p93_p11), %v86_v15, %v85_v14  ;;  %vm709_vm0 = vmmov (%p93_p11), 0   ;;  %s711_s16 = smov (%p93_p11), [#allocation8]  }
  0x47   : > { %v106_v27 = vld [vmem:[%s102_s13 + $0x18] sm:$0xff]  ;;  %v107_v28 = vadd.f32 %v697_v23, %v103_v24   ;;  %v108_v29 = vadd.f32 %v693_v22, %v104_v25   ;;  %v109_v30 = vadd.f32 %v689_v21, %v105_v26   ;;  %95 = sbr.rel (!%p93_p11) target bundleno = 68 (0x44), region = 99  ;;  %403 = vmatprep.subr.bf16.mxu0 (%p93_p11), %v708_v34  ;;  %409 = vmatprep.subr.bf16.mxu1 (%p93_p11), %v708_v34  ;;  %v710_v37 = vmov (%p93_p11), 0.0   ;;  %v111_v38 = vld [vmem:[#allocation2] sm:$0xff] (%p93_p11)  ;;  %s303_s17 = sshll.u32 (%p93_p11), %s711_s16, 4  ;;  %s304_s17 = int_to_ptr.vmem [resolvable:$true] %s303_s17 }
  0x48   : > { %v110_v31 = vadd.f32 %v685_v20, %v106_v27   ;;  %405 = vmatpush3.bf16.msra.mxu0 (%p93_p11), %v404_v32  ;;  %389 = vmatprep.mubr.msk.f32.mxu0 (%p93_p11), %vm709_vm0, %v710_v37  ;;  %vm112_vm1 = vcmask (%p93_p11), 261120   ;;  %v369_v43 = vld [vmem:[%s829_s3] ss:$0 sm:$0xff] (%p93_p11)  ;;  %s712_s20 = smov (%p93_p11), [#allocation9]   ;;  %s571_s3 = scalar_lea.vmem (%p93_p11), %s304_s17, 128 }
  0x49   : > { %v688_v21 = vmov %v109_v30   ;;  %v692_v22 = vmov %v108_v29   ;;  %v696_v23 = vmov %v107_v28   ;;  %v410_v33 = vpack.c.bf16 (%p93_p11), %v108_v29, %v107_v28  ;;  %406 = vmatprep.subr.bf16.mxu0 (%p93_p11), %v708_v34  ;;  %400 = vmatprep.mubr.msk.f32.mxu1 (%p93_p11), %vm709_vm0, %v710_v37  ;;  %v370_v46 = vld [vmem:[%s830_s4] ss:$0 sm:$0xff] (%p93_p11)  ;;  %s313_s21 = sshll.u32 (%p93_p11), %s712_s20, 4  ;;  %p572_p12 = scmp.ne.s32.totalorder (%p93_p11), %s304_s17, %s571_s3  ;;  %s314_s21 = int_to_ptr.vmem [resolvable:$true] %s313_s21 }
  0x4a   : > { %v684_v20 = vmov %v110_v31   ;;  %v413_v36 = vpack.c.bf16 (%p93_p11), %v110_v31, %v109_v30  ;;  %p576_p13 = scmp.lt.s32.totalorder (%p93_p11), %s304_s17, %s304_s17  ;;  %p577_p0 = scmp.lt.s32.totalorder (%p93_p11), %s571_s3, %s571_s3 }
  0x4b   :  { %411 = vmatpush3.bf16.msra.mxu1 (%p93_p11), %v410_v33 }
  0x4c   :  { %412 = vmatprep.subr.bf16.mxu1 (%p93_p11), %v708_v34  ;;  %408 = vmatpush3.bf16.msra.mxu0 (%p93_p11), %v407_v35  ;;  %p578_p1 = por (%p93_p11), %p577_p0, %p576_p13 }
  0x4e   :  { %p579_p2 = pnand %p578_p1, %p572_p12 }
  0x4f   :  { %414 = vmatpush3.bf16.msra.mxu1 %v413_v36  ;;  %390 = vmatmul.mubr.msk.f32.vlgmr.msra.gmra.mrb[0].mxu0 %vm112_vm1, %v111_v38 }
  0x52   :  { %401 = vmatmul.mubr.msk.f32.vlgmr.msra.gmra.mrb[0].mxu1 %vm112_vm1, %v111_v38 }
 0x122   :  { %v182_v39 = vpop.f32.mrb[0].mxu0 }
 0x123   :  { %260 = vst.msk [vmem:[#allocation8] sm:$0xff] %vm112_vm1, %v182_v39  ;;  %v391_v41 = vpop.f32.mrb[1].mxu0 }
 0x125   :  { %v252_v40 = vpop.f32.mrb[0].mxu1 }
 0x126   :  { %261 = vst.msk [vmem:[#allocation9] sm:$0xff] %vm112_vm1, %v252_v40  ;;  %v402_v42 = vpop.f32.mrb[1].mxu1 }
 0x12a   :  { %v275_v44 = vld [vmem:[#allocation8] sm:$0xff] }
 0x12b   :  { %v276_v47 = vmul.f32 0.25, %v275_v44 }
 0x12d   :  { %v286_v45 = vld [vmem:[#allocation9] sm:$0xff]  ;;  %v284_v49 = vadd.f32 %v369_v43, %v276_v47 }
 0x12e   :  { %v287_v48 = vmul.f32 0.25, %v286_v45 }
 0x12f   :  { %285 = vst.msk [vmem:[#allocation8] sm:$0xff] %vm112_vm1, %v284_v49 }
 0x130   :  { %v295_v50 = vadd.f32 %v370_v46, %v287_v48 }
 0x132   :  { %296 = vst.msk [vmem:[#allocation9] sm:$0xff] %vm112_vm1, %v295_v50 }
 0x133   :  { %582 = shalt.err (!%p579_p2)
}
 0x134   :  { %s583_s22 = scalar_lea.hbm %s831_s5, 128 }
 0x135   :  { %p584_p3 = scmp.ne.s32.totalorder %s831_s5, %s583_s22  ;;  %p587_p4 = scmp.lt.u32.totalorder %s583_s22, %s831_s5 }
 0x137   :  { %p589_p5 = pnand %p587_p4, %p584_p3 }
 0x139   :  { %592 = shalt.err (!%p589_p5)
}
 0x13a   :  { %306 = dma.vmem_to_hbm [thread:$0]  %s304_s17, 128, %s831_s5, [#allocation4]  }
 0x13b   :  { %s593_s29 = scalar_lea.vmem %s314_s21, 128  ;;  %p598_p7 = scmp.lt.s32.totalorder %s314_s21, %s314_s21 }
 0x13c   :  { %p594_p6 = scmp.ne.s32.totalorder %s314_s21, %s593_s29  ;;  %p599_p8 = scmp.lt.s32.totalorder %s593_s29, %s593_s29 }
 0x13e   :  { %p600_p9 = por %p599_p8, %p598_p7 }
 0x140   :  { %p601_p10 = pnand %p600_p9, %p594_p6 }
 0x142   :  { %604 = shalt.err (!%p601_p10)
}
 0x143   :  { %s605_s0 = scalar_lea.hbm %s832_s6, 128 }
 0x144   :  { %p606_p11 = scmp.ne.s32.totalorder %s832_s6, %s605_s0  ;;  %p609_p12 = scmp.lt.u32.totalorder %s605_s0, %s832_s6 }
 0x146   :  { %p611_p13 = pnand %p609_p12, %p606_p11 }
 0x148   :  { %614 = shalt.err (!%p611_p13)
}
 0x149   :  { %316 = dma.vmem_to_hbm [thread:$0]  %s314_s21, 128, %s832_s6, [#allocation10]  }
 0x14a   :  { %659 = dma.done.wait [#allocation4], 128  }
 0x14b   :  { %660 = vsyncadd [#allocation4], 4294967168 }
 0x14c   :  { %661 = dma.done.wait [#allocation10], 128  }
 0x14d   :  { %662 = vsyncadd [#allocation10], 4294967168 }
 0x14e   :  { %323 = vsyncpa [#allocation3], 1 }
 0x14f   :  { %324 = vsyncpa [#allocation6], 1 }
 0x150   :  { %325 = vsyncpa [#allocation4], 1 }
 0x151   :  { %326 = vsyncpa [#allocation10], 1 }

</bundles_post_ra>
